<compile_context>
chip_gen: v7x
topology: tpu7x:2x2x1
jax: 0.10.0
libtpu: 0.0.40
codegen_flags: <defaults>
</compile_context>

<pallas_src>
import functools

import jax
import jax.numpy as jnp
from jax.experimental import pallas as pl
from jax.experimental.pallas import tpu as pltpu


def _cdiv(a, b):
    return (a + b - 1) // b


def _round_up(a, m):
    return _cdiv(a, m) * m


def _encoder_kernel(x_ref, w0_ref, b0_ref, w1_ref, b1_ref, wl_ref, bl_ref, o_ref):
    """Fused MLP forward on one batch tile:
    L0 -> ReLU -> (Dropout=id) -> L1 -> ReLU -> (Dropout=id) -> latent Linear -> ReLU.
    x arrives f32 and is cast to bf16 here (free VPU work hidden under the DMA);
    dots run on the MXU in bf16 with f32 accumulation; bias add + ReLU stay f32
    (v5e-safe); output stored f32 at its native (un-padded) latent width."""
    x = x_ref[...].astype(jnp.bfloat16)  # (TB, F)

    # Layer 0: Linear + ReLU  (Dropout is identity in eval mode)
    h = jnp.dot(x, w0_ref[...], preferred_element_type=jnp.float32) + b0_ref[...]
    h = jnp.maximum(h, 0.0)

    # Layer 1: Linear + ReLU  (Dropout is identity in eval mode)
    h = jnp.dot(h.astype(jnp.bfloat16), w1_ref[...],
                preferred_element_type=jnp.float32) + b1_ref[...]
    h = jnp.maximum(h, 0.0)

    # Latent layer: Linear + ReLU
    z = jnp.dot(h.astype(jnp.bfloat16), wl_ref[...],
                preferred_element_type=jnp.float32) + bl_ref[...]
    o_ref[...] = jnp.maximum(z, 0.0).astype(o_ref.dtype)


@functools.partial(jax.jit, static_argnames=("tb",))
def _encoder_pallas(x, w0_bf, b0, w1_bf, b1, wl_bf, bl, *, tb):
    """Pallas path. x: [B, F] f32, weights bf16 [in, out], biases f32 [1, out]."""
    B, F = x.shape
    H0 = w0_bf.shape[1]
    H1 = w1_bf.shape[1]
    latent = wl_bf.shape[1]

    # --- batch tiling: multiple of 16 rows (bf16 sublane packing), >= 2 grid steps
    #     so v7x's second TensorCore gets work, capped at `tb` rows per tile ---
    b_round = _round_up(B, 16)
    num_steps = max(2, _cdiv(b_round, tb))
    TB = _round_up(_cdiv(b_round, num_steps), 16)
    B_pad = _round_up(B, TB)
    grid = (B_pad // TB,)

    x_p = x if B_pad == B else jnp.pad(x, ((0, B_pad - B), (0, 0)))

    # --- size VMEM limit from actual bytes (x/out double-buffered, weights resident,
    #     intermediates + slack); stays well inside v7x's 64 MiB per-TC VMEM ---
    param_bytes = sum(a.size * a.dtype.itemsize
                      for a in (w0_bf, b0, w1_bf, b1, wl_bf, bl))
    x_tile_bytes = TB * F * 4
    out_tile_bytes = TB * latent * 4
    inter_bytes = TB * (H0 + H1) * 4
    vmem_needed = (2 * (x_tile_bytes + out_tile_bytes)
                   + 2 * param_bytes + inter_bytes + (2 << 20))
    vmem_limit = int(min(max(vmem_needed, 4 << 20), 32 << 20))

    # --- advisory cost estimate for XLA scheduling ---
    flops = 2 * B_pad * (F * H0 + H0 * H1 + H1 * latent) \
        + 2 * B_pad * (H0 + H1 + latent)
    bytes_accessed = B_pad * F * 4 + B_pad * latent * 4 + param_bytes
    cost = pl.CostEstimate(flops=flops, transcendentals=0,
                           bytes_accessed=bytes_accessed)

    resident = lambda arr: pl.BlockSpec(arr.shape, lambda i: (0, 0))  # VMEM-resident

    out_pad = pl.pallas_call(
        _encoder_kernel,
        out_shape=jax.ShapeDtypeStruct((B_pad, latent), jnp.float32),
        grid=grid,
        in_specs=[
            pl.BlockSpec((TB, F), lambda i: (i, 0)),   # streamed, double-buffered
            resident(w0_bf), resident(b0),
            resident(w1_bf), resident(b1),
            resident(wl_bf), resident(bl),
        ],
        out_specs=pl.BlockSpec((TB, latent), lambda i: (i, 0)),
        compiler_params=pltpu.CompilerParams(
            dimension_semantics=("parallel",),
            vmem_limit_bytes=vmem_limit,
        ),
        cost_estimate=cost,
    )(x_p, w0_bf, b0, w1_bf, b1, wl_bf, bl)

    return out_pad[:B, :]


@jax.jit
def _encoder_jnp(x, w0_bf, b0, w1_bf, b1, wl_bf, bl):
    """Small-batch fast path: fused jnp dot chain, same bf16-MXU / f32-epilogue numerics."""
    h = jnp.maximum(jnp.dot(x.astype(jnp.bfloat16), w0_bf,
                            preferred_element_type=jnp.float32) + b0, 0.0)
    h = jnp.maximum(jnp.dot(h.astype(jnp.bfloat16), w1_bf,
                            preferred_element_type=jnp.float32) + b1, 0.0)
    return jnp.maximum(jnp.dot(h.astype(jnp.bfloat16), wl_bf,
                               preferred_element_type=jnp.float32) + bl, 0.0)


def prepare_params(w0, b0, w1, b1, wl, bl):
    """Pre-convert weights to bf16 / biases to f32 ONCE, outside any per-call jit,
    so each forward call does not pay for the convert launches."""
    return (jnp.asarray(w0, jnp.bfloat16), jnp.asarray(b0, jnp.float32),
            jnp.asarray(w1, jnp.bfloat16), jnp.asarray(b1, jnp.float32),
            jnp.asarray(wl, jnp.bfloat16), jnp.asarray(bl, jnp.float32))


def encoder_with_latent(x, params, *, tb=2048, min_pallas_rows=256):
    """x: [B, F] f32; params from prepare_params(). Returns [B, latent] f32.
    Dispatch: plain fused jnp below `min_pallas_rows` (launch overhead dominates),
    Pallas streaming kernel above."""
    B = x.shape[0]
    if B < min_pallas_rows:
        return _encoder_jnp(x, *params)
    return _encoder_pallas(x, *params, tb=tb)


def init_linear(key, in_features, out_features, dtype=jnp.float32):
    """Deterministic PyTorch-style init: U(-1/sqrt(in), +1/sqrt(in)).
    Weight returned as [in, out] (already transposed for x @ W)."""
    kw, kb = jax.random.split(key)
    bound = 1.0 / jnp.sqrt(jnp.asarray(in_features, dtype))
    w = jax.random.uniform(kw, (in_features, out_features), dtype, -bound, bound)
    b = jax.random.uniform(kb, (1, out_features), dtype, -bound, bound)
    return w, b


def reference_forward(x, w0, b0, w1, b1, wl, bl):
    """Pure-JAX reference mirroring the kernel's bf16-input / f32-accumulate numerics."""
    f = lambda a: a.astype(jnp.bfloat16).astype(jnp.float32)
    h = jnp.maximum(f(x) @ f(w0) + b0, 0.0)
    h = jnp.maximum(f(h) @ f(w1) + b1, 0.0)
    return jnp.maximum(f(h) @ f(wl) + bl, 0.0)


if __name__ == "__main__":
    # Module config consistent with the PyTorch __init__ signature:
    #   EncoderWithLatent(layer_sizes=[64, 32], latent_size=16, input_size=32)
    input_size = 32
    layer_sizes = [64, 32]
    latent_size = 16

    key = jax.random.PRNGKey(0)
    kx, kx2, k0, k1, kl = jax.random.split(key, 5)

    w0, b0 = init_linear(k0, input_size, layer_sizes[0])
    w1, b1 = init_linear(k1, layer_sizes[0], layer_sizes[1])
    wl, bl = init_linear(kl, layer_sizes[1], latent_size)
    params = prepare_params(w0, b0, w1, b1, wl, bl)

    # --- Pallas path: batch big enough for >= 2 grid steps (tb=256 -> grid=(2,)) ---
    batch = 512
    x = jax.random.normal(kx, (batch, input_size), jnp.float32)
    out = jax.block_until_ready(encoder_with_latent(x, params, tb=256))
    ref = reference_forward(x, w0, b0, w1, b1, wl, bl)
    assert out.shape == (batch, latent_size)
    assert jnp.allclose(out, ref, atol=1e-2, rtol=1e-2), "pallas path mismatch vs reference"

    # --- small-B fast path (plain fused jnp; kernel overhead not worth it at B=8) ---
    batch_s = 8
    x_s = jax.random.normal(kx2, (batch_s, input_size), jnp.float32)
    out_s = jax.block_until_ready(encoder_with_latent(x_s, params))
    ref_s = reference_forward(x_s, w0, b0, w1, b1, wl, bl)
    assert out_s.shape == (batch_s, latent_size)
    assert jnp.allclose(out_s, ref_s, atol=1e-2, rtol=1e-2), "small-B path mismatch vs reference"

    print("KERNEL_OK")
</pallas_src>

<mosaic_0001>
module attributes {stable_mosaic.version = 11 : i64} {
  func.func @_encoder_kernel(%arg0: i32, %arg1: memref<256x32xf32, #tpu.memory_space<vmem>>, %arg2: memref<32x64xbf16, #tpu.memory_space<vmem>>, %arg3: memref<1x64xf32, #tpu.memory_space<vmem>>, %arg4: memref<64x32xbf16, #tpu.memory_space<vmem>>, %arg5: memref<1x32xf32, #tpu.memory_space<vmem>>, %arg6: memref<32x16xbf16, #tpu.memory_space<vmem>>, %arg7: memref<1x16xf32, #tpu.memory_space<vmem>>, %arg8: memref<256x16xf32, #tpu.memory_space<vmem>>) attributes {dimension_semantics = [#tpu.dimension_semantics<parallel>], iteration_bounds = array<i64: 2>, scalar_prefetch = 0 : i64, scratch_operands = 0 : i64, tpu.core_type = #tpu.core_type<tc>, window_params = [{transform_indices = @transform_0, window_bounds = array<i64: 256, 32>}, {pipeline_mode = #tpu.pipeline_mode<synchronous>, transform_indices = @transform_1, window_bounds = array<i64: 32, 64>}, {pipeline_mode = #tpu.pipeline_mode<synchronous>, transform_indices = @transform_2, window_bounds = array<i64: 1, 64>}, {pipeline_mode = #tpu.pipeline_mode<synchronous>, transform_indices = @transform_3, window_bounds = array<i64: 64, 32>}, {pipeline_mode = #tpu.pipeline_mode<synchronous>, transform_indices = @transform_4, window_bounds = array<i64: 1, 32>}, {pipeline_mode = #tpu.pipeline_mode<synchronous>, transform_indices = @transform_5, window_bounds = array<i64: 32, 16>}, {pipeline_mode = #tpu.pipeline_mode<synchronous>, transform_indices = @transform_6, window_bounds = array<i64: 1, 16>}, {transform_indices = @transform_7, window_bounds = array<i64: 256, 16>}]} {
    %c0 = arith.constant 0 : index
    %c0_0 = arith.constant 0 : index
    %0 = vector.load %arg1[%c0, %c0_0] : memref<256x32xf32, #tpu.memory_space<vmem>>, vector<256x32xf32>
    %1 = arith.truncf %0 : vector<256x32xf32> to vector<256x32xbf16>
    %c0_1 = arith.constant 0 : index
    %c0_2 = arith.constant 0 : index
    %2 = vector.load %arg2[%c0_1, %c0_2] : memref<32x64xbf16, #tpu.memory_space<vmem>>, vector<32x64xbf16>
    %cst = arith.constant dense<0.000000e+00> : vector<256x64xf32>
    %3 = tpu.matmul %1, %2, %cst {dimension_numbers = #tpu.dot_dimension_numbers<[1], [0], [0], [1], [0, 0, 1, 1], [], []>} : vector<256x32xbf16>, vector<32x64xbf16>, vector<256x64xf32> -> vector<256x64xf32>
    %c0_3 = arith.constant 0 : index
    %c0_4 = arith.constant 0 : index
    %4 = vector.load %arg3[%c0_3, %c0_4] : memref<1x64xf32, #tpu.memory_space<vmem>>, vector<1x64xf32>
    %5 = vector.broadcast %4 : vector<1x64xf32> to vector<256x64xf32>
    %6 = arith.addf %3, %5 : vector<256x64xf32>
    %cst_5 = arith.constant 0.000000e+00 : f32
    %7 = vector.broadcast %cst_5 : f32 to vector<256x64xf32>
    %8 = arith.maximumf %6, %7 : vector<256x64xf32>
    %9 = arith.truncf %8 : vector<256x64xf32> to vector<256x64xbf16>
    %c0_6 = arith.constant 0 : index
    %c0_7 = arith.constant 0 : index
    %10 = vector.load %arg4[%c0_6, %c0_7] : memref<64x32xbf16, #tpu.memory_space<vmem>>, vector<64x32xbf16>
    %cst_8 = arith.constant dense<0.000000e+00> : vector<256x32xf32>
    %11 = tpu.matmul %9, %10, %cst_8 {dimension_numbers = #tpu.dot_dimension_numbers<[1], [0], [0], [1], [0, 0, 1, 1], [], []>} : vector<256x64xbf16>, vector<64x32xbf16>, vector<256x32xf32> -> vector<256x32xf32>
    %c0_9 = arith.constant 0 : index
    %c0_10 = arith.constant 0 : index
    %12 = vector.load %arg5[%c0_9, %c0_10] : memref<1x32xf32, #tpu.memory_space<vmem>>, vector<1x32xf32>
    %13 = vector.broadcast %12 : vector<1x32xf32> to vector<256x32xf32>
    %14 = arith.addf %11, %13 : vector<256x32xf32>
    %cst_11 = arith.constant 0.000000e+00 : f32
    %15 = vector.broadcast %cst_11 : f32 to vector<256x32xf32>
    %16 = arith.maximumf %14, %15 : vector<256x32xf32>
    %17 = arith.truncf %16 : vector<256x32xf32> to vector<256x32xbf16>
    %c0_12 = arith.constant 0 : index
    %c0_13 = arith.constant 0 : index
    %18 = vector.load %arg6[%c0_12, %c0_13] : memref<32x16xbf16, #tpu.memory_space<vmem>>, vector<32x16xbf16>
    %cst_14 = arith.constant dense<0.000000e+00> : vector<256x16xf32>
    %19 = tpu.matmul %17, %18, %cst_14 {dimension_numbers = #tpu.dot_dimension_numbers<[1], [0], [0], [1], [0, 0, 1, 1], [], []>} : vector<256x32xbf16>, vector<32x16xbf16>, vector<256x16xf32> -> vector<256x16xf32>
    %c0_15 = arith.constant 0 : index
    %c0_16 = arith.constant 0 : index
    %20 = vector.load %arg7[%c0_15, %c0_16] : memref<1x16xf32, #tpu.memory_space<vmem>>, vector<1x16xf32>
    %21 = vector.broadcast %20 : vector<1x16xf32> to vector<256x16xf32>
    %22 = arith.addf %19, %21 : vector<256x16xf32>
    %cst_17 = arith.constant 0.000000e+00 : f32
    %23 = vector.broadcast %cst_17 : f32 to vector<256x16xf32>
    %24 = arith.maximumf %22, %23 : vector<256x16xf32>
    %c0_18 = arith.constant 0 : index
    %c0_19 = arith.constant 0 : index
    %25 = vector.load %arg8[%c0_18, %c0_19] : memref<256x16xf32, #tpu.memory_space<vmem>>, vector<256x16xf32>
    tpu.vector_store %arg8[%c0_18, %c0_19], %24 {strides = array<i32>} : memref<256x16xf32, #tpu.memory_space<vmem>>, vector<256x16xf32>,
    return
  }
  func.func @transform_0(%arg0: i32) -> (i32, i32) {
    %c0_i32 = arith.constant 0 : i32
    %c0_i32_0 = arith.constant 0 : i32
    return %arg0, %c0_i32 : i32, i32
  }
  func.func @transform_1(%arg0: i32) -> (i32, i32) {
    %c0_i32 = arith.constant 0 : i32
    %c0_i32_0 = arith.constant 0 : i32
    %c0_i32_1 = arith.constant 0 : i32
    return %c0_i32, %c0_i32_0 : i32, i32
  }
  func.func @transform_2(%arg0: i32) -> (i32, i32) {
    %c0_i32 = arith.constant 0 : i32
    %c0_i32_0 = arith.constant 0 : i32
    %c0_i32_1 = arith.constant 0 : i32
    return %c0_i32, %c0_i32_0 : i32, i32
  }
  func.func @transform_3(%arg0: i32) -> (i32, i32) {
    %c0_i32 = arith.constant 0 : i32
    %c0_i32_0 = arith.constant 0 : i32
    %c0_i32_1 = arith.constant 0 : i32
    return %c0_i32, %c0_i32_0 : i32, i32
  }
  func.func @transform_4(%arg0: i32) -> (i32, i32) {
    %c0_i32 = arith.constant 0 : i32
    %c0_i32_0 = arith.constant 0 : i32
    %c0_i32_1 = arith.constant 0 : i32
    return %c0_i32, %c0_i32_0 : i32, i32
  }
  func.func @transform_5(%arg0: i32) -> (i32, i32) {
    %c0_i32 = arith.constant 0 : i32
    %c0_i32_0 = arith.constant 0 : i32
    %c0_i32_1 = arith.constant 0 : i32
    return %c0_i32, %c0_i32_0 : i32, i32
  }
  func.func @transform_6(%arg0: i32) -> (i32, i32) {
    %c0_i32 = arith.constant 0 : i32
    %c0_i32_0 = arith.constant 0 : i32
    %c0_i32_1 = arith.constant 0 : i32
    return %c0_i32, %c0_i32_0 : i32, i32
  }
  func.func @transform_7(%arg0: i32) -> (i32, i32) {
    %c0_i32 = arith.constant 0 : i32
    %c0_i32_0 = arith.constant 0 : i32
    return %arg0, %c0_i32 : i32, i32
  }
}

</mosaic_0001>

<bundles_post_ra>
// kernel: _encoder_pallas.1
= control target key start
LH: loop header
LB: loop body
LE: loop exit
PB: predicated region body
PF: predicated region fallthrough
CT: control target
= control target key end

     0   :  { %s1568_s24 = smov 0   ;;  %s1881_s0 = inlined_call_operand.vmem [shape: f32[512,32], index: 0, kind: input, shape index: {}]   ;;  %s1882_s1 = inlined_call_operand.vmem [shape: bf16[32,64], index: 1, kind: input, shape index: {}]   ;;  %s1883_s2 = inlined_call_operand.vmem [shape: f32[1,64], index: 2, kind: input, shape index: {}]   ;;  %s1884_s3 = inlined_call_operand.vmem [shape: bf16[64,32], index: 3, kind: input, shape index: {}]   ;;  %s1885_s4 = inlined_call_operand.vmem [shape: f32[1,32], index: 4, kind: input, shape index: {}]   ;;  %s1886_s5 = inlined_call_operand.vmem [shape: bf16[32,16], index: 5, kind: input, shape index: {}]   ;;  %s1887_s6 = inlined_call_operand.vmem [shape: f32[1,16], index: 6, kind: input, shape index: {}]   ;;  %s1888_s7 = inlined_call_operand.vmem [shape: f32[512,16], index: 7, kind: output, shape index: {}]  }
   0x1 LB: > { %s1262_s25 = sadd.s32 4294967295, %s1526_s24   ;;  %p1266_p0 = scmp.ge.s32.totalorder %s1526_s24, 1  ;;  %s1526_s24 = sphi %s1568_s24, %s17_s24  }
   0x2   : > { %p238_p1 = scmp.lt.s32.totalorder %s1526_s24, 3 }
   0x4   : > { %p239_p2 = pnand %p1266_p0, %p238_p1 }
   0x5   : > { %v1512_v0 = vld [vmem:[%s1882_s1] sm:$0xff] (!%p239_p2)   ;;  %s1267_s28 = sshll.u32 (!%p239_p2), %s1262_s25, 5  ;;  %v1513_v1 = vld [vmem:[%s1882_s1 + $0x8] sm:$0xff] (!%p239_p2)   ;;  %vm354_vm0 = vcmask (!%p239_p2), 261120   ;;  %v1516_v32 = vld [vmem:[%s1884_s3 + $0x10] sm:$0xff] (!%p239_p2)   ;;  %vm651_vm1 = vcmask (!%p239_p2), 523264  }
   0x6   : > { %242 = sbr.rel (%p239_p2) target bundleno = 740 (0x2e4), region = 48  ;;  %p271_p3 = scmp.lt.s32.totalorder (!%p239_p2), %s1267_s28, 63  ;;  %1388 = vmatprep.subr.bf16.mxu0 (!%p239_p2), %v1512_v0  ;;  %1500 = vmatprep.subr.bf16.mxu1 (!%p239_p2), %v1512_v0  ;;  %v1514_v2 = vld [vmem:[%s1884_s3] sm:$0xff] (!%p239_p2)   ;;  %v1515_v24 = vld [vmem:[%s1884_s3 + $0x8] sm:$0xff] (!%p239_p2)   ;;  %v1517_v53 = vld [vmem:[%s1884_s3 + $0x18] sm:$0xff] (!%p239_p2)   ;;  %vm1173_vm2 = vcmask (!%p239_p2), 130048  }
   0x7   : > { %1389 = vmatpush3.bf16.msra.mxu0 (!%p239_p2), %v1512_v0  ;;  %1502 = vmatpush3.bf16.msra.mxu1 (!%p239_p2), %v1512_v0  ;;  %v1518_v54 = vld [vmem:[%s1886_s5] sm:$0xff] (!%p239_p2)   ;;  %v1519_v55 = vld [vmem:[%s1886_s5 + $0x8] sm:$0xff] (!%p239_p2)  }
   0x8   : > { %1390 = vmatprep.subr.bf16.mxu0 (!%p239_p2), %v1513_v1  ;;  %1501 = vmatprep.subr.bf16.mxu1 (!%p239_p2), %v1513_v1  ;;  %v1661_v56 = vld [vmem:[%s1883_s2] ss:$0 sm:$0xff] (!%p239_p2) }
   0xb   : > { %1391 = vmatpush3.bf16.msra.mxu0 (!%p239_p2), %v1513_v1  ;;  %1503 = vmatpush3.bf16.msra.mxu1 (!%p239_p2), %v1513_v1 }
   0xc   : > { %1424 = vmatprep.subr.bf16.mxu1 (!%p239_p2), %v1514_v2  ;;  %1464 = vmatprep.subr.bf16.mxu0 (!%p239_p2), %v1518_v54 }
   0xd   : > { %s1890_s28 = smov (!%p271_p3, %s1267_s28), 63 }
   0xe   : > { %s1268_s10 = sshll.u32 %s1890_s28, 3 }
   0xf   : > { %s1593_s13 = scalar_lea.vmem %s1881_s0, %s1268_s10  ;;  %s1781_s12 = scalar_lea.vmem %s1888_s7, %s1268_s10 }
  0x10   : > { %v283_v3 = vld [vmem:[%s1593_s13] sm:$0xff]  ;;  %v284_v4 = vld [vmem:[%s1593_s13 + $0x8] sm:$0xff]  ;;  %v285_v5 = vld [vmem:[%s1593_s13 + $0x10] sm:$0xff] }
  0x11   : > { %v315_v6 = vpack.c.bf16 %v284_v4, %v283_v3  ;;  %v286_v7 = vld [vmem:[%s1593_s13 + $0x18] sm:$0xff]  ;;  %v287_v8 = vld [vmem:[%s1593_s13 + $0x20] sm:$0xff]  ;;  %v288_v9 = vld [vmem:[%s1593_s13 + $0x28] sm:$0xff] }
  0x12   : > { %v316_v10 = vpack.c.bf16 %v286_v7, %v285_v5  ;;  %v317_v11 = vpack.c.bf16 %v288_v9, %v287_v8  ;;  %v289_v12 = vld [vmem:[%s1593_s13 + $0x30] sm:$0xff]  ;;  %v290_v13 = vld [vmem:[%s1593_s13 + $0x38] sm:$0xff]  ;;  %v291_v14 = vld [vmem:[%s1593_s13 + $0x40] sm:$0xff] }
  0x13   : > { %1392 = vmatprep.mubr.msk.bf16.mxu0 %vm354_vm0, %v315_v6  ;;  %v292_v15 = vld [vmem:[%s1593_s13 + $0x48] sm:$0xff]  ;;  %v299_v16 = vld [vmem:[%s1593_s13 + $0x80] sm:$0xff]  ;;  %v301_v19 = vld [vmem:[%s1593_s13 + $0x90] sm:$0xff]  ;;  %v318_v25 = vpack.c.bf16 %v290_v13, %v289_v12 }
  0x14   : > { %1393 = vmatmul.mubr.msk.bf16.vlgmr.msra.gmra.mrb[0].mxu0 %vm354_vm0, %v316_v10  ;;  %v300_v17 = vld [vmem:[%s1593_s13 + $0x88] sm:$0xff]  ;;  %v302_v20 = vld [vmem:[%s1593_s13 + $0x98] sm:$0xff]  ;;  %v303_v21 = vld [vmem:[%s1593_s13 + $0xa0] sm:$0xff]  ;;  %v319_v27 = vpack.c.bf16 %v292_v15, %v291_v14 }
  0x15   : > { %1396 = vmatprep.mubr.msk.bf16.mxu0 %vm354_vm0, %v317_v11  ;;  %v323_v18 = vpack.c.bf16 %v300_v17, %v299_v16  ;;  %v324_v22 = vpack.c.bf16 %v302_v20, %v301_v19  ;;  %v304_v23 = vld [vmem:[%s1593_s13 + $0xa8] sm:$0xff]  ;;  %v305_v28 = vld [vmem:[%s1593_s13 + $0xb0] sm:$0xff]  ;;  %v306_v29 = vld [vmem:[%s1593_s13 + $0xb8] sm:$0xff]  ;;  %1465 = vmatpush3.bf16.msra.mxu0 %v1518_v54 }
  0x16   : > { %v325_v26 = vpack.c.bf16 %v304_v23, %v303_v21  ;;  %v307_v30 = vld [vmem:[%s1593_s13 + $0xc0] sm:$0xff]  ;;  %v308_v31 = vld [vmem:[%s1593_s13 + $0xc8] sm:$0xff]  ;;  %v293_v33 = vld [vmem:[%s1593_s13 + $0x50] sm:$0xff]  ;;  %v326_v35 = vpack.c.bf16 %v306_v29, %v305_v28  ;;  %1466 = vmatprep.subr.bf16.mxu0 %v1519_v55 }
  0x17   : > { %1408 = vmatprep.mubr.msk.bf16.mxu1 %vm354_vm0, %v323_v18  ;;  %v294_v34 = vld [vmem:[%s1593_s13 + $0x58] sm:$0xff]  ;;  %v295_v36 = vld [vmem:[%s1593_s13 + $0x60] sm:$0xff]  ;;  %v296_v37 = vld [vmem:[%s1593_s13 + $0x68] sm:$0xff]  ;;  %v327_v38 = vpack.c.bf16 %v308_v31, %v307_v30 }
  0x18   : > { %1409 = vmatmul.mubr.msk.bf16.vlgmr.msra.gmra.mrb[0].mxu1 %vm354_vm0, %v324_v22  ;;  %v320_v39 = vpack.c.bf16 %v294_v34, %v293_v33  ;;  %v321_v40 = vpack.c.bf16 %v296_v37, %v295_v36  ;;  %v309_v41 = vld [vmem:[%s1593_s13 + $0xd0] sm:$0xff]  ;;  %v310_v42 = vld [vmem:[%s1593_s13 + $0xd8] sm:$0xff]  ;;  %v311_v43 = vld [vmem:[%s1593_s13 + $0xe0] sm:$0xff] }
  0x19   : > { %1412 = vmatprep.mubr.msk.bf16.mxu1 %vm354_vm0, %v325_v26  ;;  %1425 = vmatpush3.bf16.msra.mxu1 %v1514_v2  ;;  %v312_v44 = vld [vmem:[%s1593_s13 + $0xe8] sm:$0xff]  ;;  %v297_v45 = vld [vmem:[%s1593_s13 + $0x70] sm:$0xff]  ;;  %v298_v46 = vld [vmem:[%s1593_s13 + $0x78] sm:$0xff]  ;;  %v328_v47 = vpack.c.bf16 %v310_v42, %v309_v41 }
  0x1a   : > { %1426 = vmatprep.subr.bf16.mxu1 %v1515_v24  ;;  %v329_v48 = vpack.c.bf16 %v312_v44, %v311_v43  ;;  %v322_v49 = vpack.c.bf16 %v298_v46, %v297_v45  ;;  %v313_v50 = vld [vmem:[%s1593_s13 + $0xf0] sm:$0xff]  ;;  %v314_v51 = vld [vmem:[%s1593_s13 + $0xf8] sm:$0xff]  ;;  %1467 = vmatpush3.bf16.msra.mxu0 %v1519_v55 }
  0x1b   : > { %v330_v52 = vpack.c.bf16 %v314_v51, %v313_v50 }
  0x1c   : > { %1397 = vmatmul.mubr.msk.bf16.gmra.mrb[4].mxu0 %vm354_vm0, %v318_v25 }
  0x1d   : > { %1400 = vmatprep.mubr.msk.bf16.mxu0 %vm354_vm0, %v319_v27  ;;  %1427 = vmatpush3.bf16.msra.mxu1 %v1515_v24 }
  0x1e   : > { %1428 = vmatprep.subr.bf16.mxu1 %v1516_v32 }
  0x20   : > { %1413 = vmatmul.mubr.msk.bf16.gmra.mrb[4].mxu1 %vm354_vm0, %v326_v35 }
  0x21   : > { %1416 = vmatprep.mubr.msk.bf16.mxu1 %vm354_vm0, %v327_v38  ;;  %1429 = vmatpush3.bf16.msra.mxu1 %v1516_v32 }
  0x22   : > { %1430 = vmatprep.subr.bf16.mxu1 %v1517_v53 }
  0x24   : > { %1401 = vmatmul.mubr.msk.bf16.gmra.mrb[8].mxu0 %vm354_vm0, %v320_v39 }
  0x25   : > { %1404 = vmatprep.mubr.msk.bf16.mxu0 %vm354_vm0, %v321_v40  ;;  %1431 = vmatpush3.bf16.msra.mxu1 %v1517_v53 }
  0x28   : > { %1417 = vmatmul.mubr.msk.bf16.gmra.mrb[8].mxu1 %vm354_vm0, %v328_v47 }
  0x29   : > { %1420 = vmatprep.mubr.msk.bf16.mxu1 %vm354_vm0, %v329_v48 }
  0x2c   : > { %1405 = vmatmul.mubr.msk.bf16.gmra.mrb[12].mxu0 %vm354_vm0, %v322_v49 }
  0x30   : > { %1421 = vmatmul.mubr.msk.bf16.gmra.mrb[12].mxu1 %vm354_vm0, %v330_v52 }
  0xe7   : > { %v1394_v57 = vpop.f32.mrb[0].mxu0 }
  0xe8   : > { %v446_v58 = vadd.f32 %v1394_v57, %v1661_v56  ;;  %v437_v59 = vpop.f32.mrb[1].mxu0 }
  0xe9   : > { %v438_v60 = vadd.f32 %v1661_v56, %v437_v59  ;;  %v1395_v61 = vpop.f32.mrb[2].mxu0 }
  0xea   : > { %v449_v62 = vadd.f32 %v1395_v61, %v1661_v56  ;;  %v440_v63 = vpop.f32.mrb[3].mxu0  ;;  %v566_v1 = vmax.f32 %v446_v58, 0.0 }
  0xeb   : > { %v441_v0 = vadd.f32 %v1661_v56, %v440_v63  ;;  %v1410_v3 = vpop.f32.mrb[0].mxu1  ;;  %v564_v4 = vmax.f32 %v438_v60, 0.0 }
  0xec   : > { %v567_v2 = vmax.f32 %v449_v62, 0.0  ;;  %v510_v6 = vadd.f32 %v1410_v3, %v1661_v56  ;;  %v501_v7 = vpop.f32.mrb[1].mxu1 }
  0xed   : > { %v565_v5 = vmax.f32 %v441_v0, 0.0  ;;  %v502_v9 = vadd.f32 %v1661_v56, %v501_v7  ;;  %v1411_v10 = vpop.f32.mrb[2].mxu1 }
  0xee   : > { %v597_v8 = vpack.c.bf16 %v567_v2, %v566_v1  ;;  %v582_v13 = vmax.f32 %v510_v6, 0.0  ;;  %v513_v14 = vadd.f32 %v1411_v10, %v1661_v56  ;;  %v504_v15 = vpop.f32.mrb[3].mxu1 }
  0xef   : > { %v596_v11 = vpack.c.bf16 %v565_v5, %v564_v4  ;;  %v1398_v12 = vpop.f32.mrb[4].mxu0  ;;  %v580_v18 = vmax.f32 %v502_v9, 0.0  ;;  %v505_v19 = vadd.f32 %v1661_v56, %v504_v15 }
  0xf0   : > { %v462_v16 = vadd.f32 %v1398_v12, %v1661_v56  ;;  %v453_v17 = vpop.f32.mrb[5].mxu0  ;;  %v583_v22 = vmax.f32 %v513_v14, 0.0 }
  0xf1   : > { %v454_v20 = vadd.f32 %v1661_v56, %v453_v17  ;;  %v1399_v21 = vpop.f32.mrb[6].mxu0  ;;  %1432 = vmatprep.mubr.msk.bf16.mxu1 %vm651_vm1, %v596_v11  ;;  %v581_v25 = vmax.f32 %v505_v19, 0.0 }
  0xf2   : > { %v465_v23 = vadd.f32 %v1399_v21, %v1661_v56  ;;  %v456_v24 = vpop.f32.mrb[7].mxu0  ;;  %1433 = vmatmul.mubr.msk.bf16.vlgmr.msra.gmra.mrb[16].mxu1 %vm651_vm1, %v597_v8  ;;  %v1677_v27 = vpack.c.bf16 %v583_v22, %v582_v13  ;;  %v570_v28 = vmax.f32 %v462_v16, 0.0 }
  0xf3   : > { %v457_v26 = vadd.f32 %v1661_v56, %v456_v24  ;;  %v1679_v30 = vpack.c.bf16 %v581_v25, %v580_v18  ;;  %v1414_v31 = vpop.f32.mrb[4].mxu1  ;;  %v568_v32 = vmax.f32 %v454_v20, 0.0 }
  0xf4   : > { %v571_v29 = vmax.f32 %v465_v23, 0.0  ;;  %v526_v34 = vadd.f32 %v1414_v31, %v1661_v56  ;;  %v517_v35 = vpop.f32.mrb[5].mxu1 }
  0xf5   : > { %v569_v33 = vmax.f32 %v457_v26, 0.0  ;;  %v518_v37 = vadd.f32 %v1661_v56, %v517_v35  ;;  %v1415_v38 = vpop.f32.mrb[6].mxu1 }
  0xf6   : > { %v599_v36 = vpack.c.bf16 %v571_v29, %v570_v28  ;;  %v586_v41 = vmax.f32 %v526_v34, 0.0  ;;  %v529_v42 = vadd.f32 %v1415_v38, %v1661_v56  ;;  %v520_v43 = vpop.f32.mrb[7].mxu1 }
  0xf7   : > { %v598_v39 = vpack.c.bf16 %v569_v33, %v568_v32  ;;  %v1402_v40 = vpop.f32.mrb[8].mxu0  ;;  %v584_v46 = vmax.f32 %v518_v37, 0.0  ;;  %v521_v47 = vadd.f32 %v1661_v56, %v520_v43 }
  0xf8   : > { %v478_v44 = vadd.f32 %v1402_v40, %v1661_v56  ;;  %v469_v45 = vpop.f32.mrb[9].mxu0  ;;  %v587_v50 = vmax.f32 %v529_v42, 0.0 }
  0xf9   : > { %v470_v48 = vadd.f32 %v1661_v56, %v469_v45  ;;  %v1403_v49 = vpop.f32.mrb[10].mxu0  ;;  %1436 = vmatprep.mubr.msk.bf16.mxu1 %vm651_vm1, %v598_v39  ;;  %v585_v53 = vmax.f32 %v521_v47, 0.0 }
  0xfa   : > { %v481_v51 = vadd.f32 %v1403_v49, %v1661_v56  ;;  %v472_v52 = vpop.f32.mrb[11].mxu0  ;;  %1437 = vmatmul.mubr.msk.bf16.gmra.mrb[20].mxu1 %vm651_vm1, %v599_v36  ;;  %v607_v55 = vpack.c.bf16 %v587_v50, %v586_v41  ;;  %v574_v57 = vmax.f32 %v478_v44, 0.0 }
  0xfb   : > { %v473_v54 = vadd.f32 %v1661_v56, %v472_v52  ;;  %v606_v59 = vpack.c.bf16 %v585_v53, %v584_v46  ;;  %v1418_v60 = vpop.f32.mrb[8].mxu1  ;;  %v572_v61 = vmax.f32 %v470_v48, 0.0 }
  0xfc   : > { %v575_v58 = vmax.f32 %v481_v51, 0.0  ;;  %v542_v63 = vadd.f32 %v1418_v60, %v1661_v56  ;;  %v533_v0 = vpop.f32.mrb[9].mxu1 }
  0xfd   : > { %v573_v62 = vmax.f32 %v473_v54, 0.0  ;;  %v534_v2 = vadd.f32 %v1661_v56, %v533_v0  ;;  %v1419_v3 = vpop.f32.mrb[10].mxu1 }
  0xfe   : > { %v601_v1 = vpack.c.bf16 %v575_v58, %v574_v57  ;;  %v590_v6 = vmax.f32 %v542_v63, 0.0  ;;  %v545_v7 = vadd.f32 %v1419_v3, %v1661_v56  ;;  %v536_v8 = vpop.f32.mrb[11].mxu1 }
  0xff   : > { %v600_v4 = vpack.c.bf16 %v573_v62, %v572_v61  ;;  %v1406_v5 = vpop.f32.mrb[12].mxu0  ;;  %v588_v11 = vmax.f32 %v534_v2, 0.0  ;;  %v537_v12 = vadd.f32 %v1661_v56, %v536_v8 }
 0x100   : > { %v494_v9 = vadd.f32 %v1406_v5, %v1661_v56  ;;  %v485_v10 = vpop.f32.mrb[13].mxu0  ;;  %v591_v15 = vmax.f32 %v545_v7, 0.0 }
 0x101   : > { %v486_v13 = vadd.f32 %v1661_v56, %v485_v10  ;;  %v1407_v14 = vpop.f32.mrb[14].mxu0  ;;  %1440 = vmatprep.mubr.msk.bf16.mxu1 %vm651_vm1, %v600_v4  ;;  %v589_v18 = vmax.f32 %v537_v12, 0.0 }
 0x102   : > { %v497_v16 = vadd.f32 %v1407_v14, %v1661_v56  ;;  %v488_v17 = vpop.f32.mrb[15].mxu0  ;;  %1441 = vmatmul.mubr.msk.bf16.gmra.mrb[24].mxu1 %vm651_vm1, %v601_v1  ;;  %v609_v20 = vpack.c.bf16 %v591_v15, %v590_v6  ;;  %v578_v21 = vmax.f32 %v494_v9, 0.0 }
 0x103   : > { %v489_v19 = vadd.f32 %v1661_v56, %v488_v17  ;;  %v608_v23 = vpack.c.bf16 %v589_v18, %v588_v11  ;;  %v1422_v24 = vpop.f32.mrb[12].mxu1  ;;  %v576_v25 = vmax.f32 %v486_v13, 0.0 }
 0x104   : > { %v579_v22 = vmax.f32 %v497_v16, 0.0  ;;  %v558_v28 = vadd.f32 %v1422_v24, %v1661_v56  ;;  %v549_v29 = vpop.f32.mrb[13].mxu1 }
 0x105   : > { %v577_v26 = vmax.f32 %v489_v19, 0.0  ;;  %v550_v32 = vadd.f32 %v1661_v56, %v549_v29  ;;  %v1423_v33 = vpop.f32.mrb[14].mxu1 }
 0x106   : > { %v603_v31 = vpack.c.bf16 %v579_v22, %v578_v21  ;;  %v594_v35 = vmax.f32 %v558_v28, 0.0  ;;  %v561_v36 = vadd.f32 %v1423_v33, %v1661_v56  ;;  %v552_v37 = vpop.f32.mrb[15].mxu1 }
 0x107   : > { %v602_v34 = vpack.c.bf16 %v577_v26, %v576_v25  ;;  %v592_v38 = vmax.f32 %v550_v32, 0.0  ;;  %v553_v39 = vadd.f32 %v1661_v56, %v552_v37  ;;  %v1720_v56 = vld [vmem:[%s1885_s4] ss:$0 sm:$0xff] }
 0x108   : > { %v595_v40 = vmax.f32 %v561_v36, 0.0 }
 0x109   : > { %1444 = vmatprep.mubr.msk.bf16.mxu1 %vm651_vm1, %v602_v34  ;;  %v593_v41 = vmax.f32 %v553_v39, 0.0 }
 0x10a   : > { %1445 = vmatmul.mubr.msk.bf16.gmra.mrb[28].mxu1 %vm651_vm1, %v603_v31  ;;  %v611_v42 = vpack.c.bf16 %v595_v40, %v594_v35 }
 0x10b   : > { %1448 = vmatprep.mubr.msk.bf16.mxu1 %vm651_vm1, %v1679_v30  ;;  %v610_v43 = vpack.c.bf16 %v593_v41, %v592_v38 }
 0x112   : > { %1449 = vmatmul.mubr.msk.bf16.gmra.mrb[32].mxu1 %vm651_vm1, %v1677_v27 }
 0x113   : > { %1452 = vmatprep.mubr.msk.bf16.mxu1 %vm651_vm1, %v606_v59 }
 0x11a   : > { %1453 = vmatmul.mubr.msk.bf16.gmra.mrb[36].mxu1 %vm651_vm1, %v607_v55 }
 0x11b   : > { %1456 = vmatprep.mubr.msk.bf16.mxu1 %vm651_vm1, %v608_v23 }
 0x122   : > { %1457 = vmatmul.mubr.msk.bf16.gmra.mrb[40].mxu1 %vm651_vm1, %v609_v20 }
 0x123   : > { %1460 = vmatprep.mubr.msk.bf16.mxu1 %vm651_vm1, %v610_v43 }
 0x12a   : > { %1461 = vmatmul.mubr.msk.bf16.gmra.mrb[44].mxu1 %vm651_vm1, %v611_v42 }
 0x1c5   : > { %v1434_v30 = vpop.f32.mrb[16].mxu1 }
 0x1c6   : > { %v743_v27 = vadd.f32 %v1434_v30, %v1720_v56  ;;  %v734_v44 = vpop.f32.mrb[17].mxu1 }
 0x1c7   : > { %v735_v45 = vadd.f32 %v1720_v56, %v734_v44  ;;  %v1435_v46 = vpop.f32.mrb[18].mxu1 }
 0x1c8   : > { %v746_v47 = vadd.f32 %v1435_v46, %v1720_v56  ;;  %v737_v48 = vpop.f32.mrb[19].mxu1  ;;  %v863_v50 = vmax.f32 %v743_v27, 0.0 }
 0x1c9   : > { %v738_v49 = vadd.f32 %v1720_v56, %v737_v48  ;;  %v861_v52 = vmax.f32 %v735_v45, 0.0 }
 0x1ca   : > { %v864_v51 = vmax.f32 %v746_v47, 0.0 }
 0x1cb   : > { %v862_v53 = vmax.f32 %v738_v49, 0.0 }
 0x1cc   : > { %v894_v54 = vpack.c.bf16 %v864_v51, %v863_v50 }
 0x1cd   : > { %v893_v55 = vpack.c.bf16 %v862_v53, %v861_v52  ;;  %v1438_v57 = vpop.f32.mrb[20].mxu1 }
 0x1ce   : > { %v759_v58 = vadd.f32 %v1438_v57, %v1720_v56  ;;  %v750_v59 = vpop.f32.mrb[21].mxu1 }
 0x1cf   : > { %v751_v60 = vadd.f32 %v1720_v56, %v750_v59  ;;  %v1439_v61 = vpop.f32.mrb[22].mxu1  ;;  %1468 = vmatprep.mubr.msk.bf16.mxu0 %vm354_vm0, %v893_v55 }
 0x1d0   : > { %v762_v62 = vadd.f32 %v1439_v61, %v1720_v56  ;;  %v753_v63 = vpop.f32.mrb[23].mxu1  ;;  %1469 = vmatmul.mubr.msk.bf16.vlgmr.msra.gmra.mrb[16].mxu0 %vm354_vm0, %v894_v54  ;;  %v867_v1 = vmax.f32 %v759_v58, 0.0 }
 0x1d1   : > { %v754_v0 = vadd.f32 %v1720_v56, %v753_v63  ;;  %v865_v3 = vmax.f32 %v751_v60, 0.0 }
 0x1d2   : > { %v868_v2 = vmax.f32 %v762_v62, 0.0 }
 0x1d3   : > { %v866_v4 = vmax.f32 %v754_v0, 0.0 }
 0x1d4   : > { %v896_v5 = vpack.c.bf16 %v868_v2, %v867_v1 }
 0x1d5   : > { %v895_v6 = vpack.c.bf16 %v866_v4, %v865_v3  ;;  %v1442_v7 = vpop.f32.mrb[24].mxu1 }
 0x1d6   : > { %v775_v8 = vadd.f32 %v1442_v7, %v1720_v56  ;;  %v766_v9 = vpop.f32.mrb[25].mxu1 }
 0x1d7   : > { %v767_v10 = vadd.f32 %v1720_v56, %v766_v9  ;;  %v1443_v11 = vpop.f32.mrb[26].mxu1  ;;  %1472 = vmatprep.mubr.msk.bf16.mxu0 %vm354_vm0, %v895_v6 }
 0x1d8   : > { %v778_v12 = vadd.f32 %v1443_v11, %v1720_v56  ;;  %v769_v13 = vpop.f32.mrb[27].mxu1  ;;  %1473 = vmatmul.mubr.msk.bf16.gmra.mrb[20].mxu0 %vm354_vm0, %v896_v5  ;;  %v871_v15 = vmax.f32 %v775_v8, 0.0 }
 0x1d9   : > { %v770_v14 = vadd.f32 %v1720_v56, %v769_v13  ;;  %v869_v17 = vmax.f32 %v767_v10, 0.0 }
 0x1da   : > { %v872_v16 = vmax.f32 %v778_v12, 0.0 }
 0x1db   : > { %v870_v18 = vmax.f32 %v770_v14, 0.0 }
 0x1dc   : > { %v898_v19 = vpack.c.bf16 %v872_v16, %v871_v15 }
 0x1dd   : > { %v897_v20 = vpack.c.bf16 %v870_v18, %v869_v17  ;;  %v1446_v21 = vpop.f32.mrb[28].mxu1 }
 0x1de   : > { %v791_v22 = vadd.f32 %v1446_v21, %v1720_v56  ;;  %v782_v23 = vpop.f32.mrb[29].mxu1 }
 0x1df   : > { %v783_v24 = vadd.f32 %v1720_v56, %v782_v23  ;;  %v1447_v25 = vpop.f32.mrb[30].mxu1  ;;  %1476 = vmatprep.mubr.msk.bf16.mxu0 %vm354_vm0, %v897_v20 }
 0x1e0   : > { %v794_v26 = vadd.f32 %v1447_v25, %v1720_v56  ;;  %v785_v28 = vpop.f32.mrb[31].mxu1  ;;  %1477 = vmatmul.mubr.msk.bf16.gmra.mrb[24].mxu0 %vm354_vm0, %v898_v19  ;;  %v875_v31 = vmax.f32 %v791_v22, 0.0 }
 0x1e1   : > { %v786_v29 = vadd.f32 %v1720_v56, %v785_v28  ;;  %v873_v33 = vmax.f32 %v783_v24, 0.0 }
 0x1e2   : > { %v876_v32 = vmax.f32 %v794_v26, 0.0 }
 0x1e3   : > { %v874_v34 = vmax.f32 %v786_v29, 0.0  ;;  %v1773_v29 = vld [vmem:[%s1887_s6] ss:$0 sm:$0xff] }
 0x1e4   : > { %v900_v35 = vpack.c.bf16 %v876_v32, %v875_v31 }
 0x1e5   : > { %v899_v36 = vpack.c.bf16 %v874_v34, %v873_v33  ;;  %v1450_v37 = vpop.f32.mrb[32].mxu1 }
 0x1e6   : > { %v807_v38 = vadd.f32 %v1450_v37, %v1720_v56  ;;  %v798_v39 = vpop.f32.mrb[33].mxu1 }
 0x1e7   : > { %v799_v40 = vadd.f32 %v1720_v56, %v798_v39  ;;  %v1451_v41 = vpop.f32.mrb[34].mxu1  ;;  %1480 = vmatprep.mubr.msk.bf16.mxu0 %vm354_vm0, %v899_v36 }
 0x1e8   : > { %v810_v42 = vadd.f32 %v1451_v41, %v1720_v56  ;;  %v801_v43 = vpop.f32.mrb[35].mxu1  ;;  %1481 = vmatmul.mubr.msk.bf16.gmra.mrb[28].mxu0 %vm354_vm0, %v900_v35  ;;  %v879_v27 = vmax.f32 %v807_v38, 0.0 }
 0x1e9   : > { %v802_v30 = vadd.f32 %v1720_v56, %v801_v43  ;;  %v877_v45 = vmax.f32 %v799_v40, 0.0 }
 0x1ea   : > { %v880_v44 = vmax.f32 %v810_v42, 0.0 }
 0x1eb   : > { %v878_v46 = vmax.f32 %v802_v30, 0.0 }
 0x1ec   : > { %v902_v47 = vpack.c.bf16 %v880_v44, %v879_v27 }
 0x1ed   : > { %v901_v48 = vpack.c.bf16 %v878_v46, %v877_v45  ;;  %v1454_v49 = vpop.f32.mrb[36].mxu1 }
 0x1ee   : > { %v823_v50 = vadd.f32 %v1454_v49, %v1720_v56  ;;  %v814_v51 = vpop.f32.mrb[37].mxu1 }
 0x1ef   : > { %v815_v52 = vadd.f32 %v1720_v56, %v814_v51  ;;  %v1455_v53 = vpop.f32.mrb[38].mxu1  ;;  %1484 = vmatprep.mubr.msk.bf16.mxu0 %vm354_vm0, %v901_v48 }
 0x1f0   : > { %v826_v54 = vadd.f32 %v1455_v53, %v1720_v56  ;;  %v817_v55 = vpop.f32.mrb[39].mxu1  ;;  %1485 = vmatmul.mubr.msk.bf16.gmra.mrb[32].mxu0 %vm354_vm0, %v902_v47  ;;  %v883_v58 = vmax.f32 %v823_v50, 0.0 }
 0x1f1   : > { %v818_v57 = vadd.f32 %v1720_v56, %v817_v55  ;;  %v881_v60 = vmax.f32 %v815_v52, 0.0 }
 0x1f2   : > { %v884_v59 = vmax.f32 %v826_v54, 0.0 }
 0x1f3   : > { %v882_v61 = vmax.f32 %v818_v57, 0.0 }
 0x1f4   : > { %v904_v62 = vpack.c.bf16 %v884_v59, %v883_v58 }
 0x1f5   : > { %v903_v63 = vpack.c.bf16 %v882_v61, %v881_v60  ;;  %v1458_v0 = vpop.f32.mrb[40].mxu1 }
 0x1f6   : > { %v839_v1 = vadd.f32 %v1458_v0, %v1720_v56  ;;  %v830_v2 = vpop.f32.mrb[41].mxu1 }
 0x1f7   : > { %v831_v3 = vadd.f32 %v1720_v56, %v830_v2  ;;  %v1459_v4 = vpop.f32.mrb[42].mxu1  ;;  %1488 = vmatprep.mubr.msk.bf16.mxu0 %vm354_vm0, %v903_v63 }
 0x1f8   : > { %v842_v5 = vadd.f32 %v1459_v4, %v1720_v56  ;;  %v833_v6 = vpop.f32.mrb[43].mxu1  ;;  %1489 = vmatmul.mubr.msk.bf16.gmra.mrb[36].mxu0 %vm354_vm0, %v904_v62  ;;  %v887_v8 = vmax.f32 %v839_v1, 0.0 }
 0x1f9   : > { %v834_v7 = vadd.f32 %v1720_v56, %v833_v6  ;;  %v885_v10 = vmax.f32 %v831_v3, 0.0 }
 0x1fa   : > { %v888_v9 = vmax.f32 %v842_v5, 0.0 }
 0x1fb   : > { %v886_v11 = vmax.f32 %v834_v7, 0.0 }
 0x1fc   : > { %v906_v12 = vpack.c.bf16 %v888_v9, %v887_v8 }
 0x1fd   : > { %v905_v13 = vpack.c.bf16 %v886_v11, %v885_v10  ;;  %v1462_v14 = vpop.f32.mrb[44].mxu1 }
 0x1fe   : > { %v855_v15 = vadd.f32 %v1462_v14, %v1720_v56  ;;  %v846_v16 = vpop.f32.mrb[45].mxu1 }
 0x1ff   : > { %v847_v17 = vadd.f32 %v1720_v56, %v846_v16  ;;  %v1463_v18 = vpop.f32.mrb[46].mxu1  ;;  %1492 = vmatprep.mubr.msk.bf16.mxu0 %vm354_vm0, %v905_v13 }
 0x200   : > { %v858_v19 = vadd.f32 %v1463_v18, %v1720_v56  ;;  %v849_v20 = vpop.f32.mrb[47].mxu1  ;;  %1493 = vmatmul.mubr.msk.bf16.gmra.mrb[40].mxu0 %vm354_vm0, %v906_v12  ;;  %v891_v22 = vmax.f32 %v855_v15, 0.0 }
 0x201   : > { %v850_v21 = vadd.f32 %v1720_v56, %v849_v20  ;;  %v889_v24 = vmax.f32 %v847_v17, 0.0 }
 0x202   : > { %v892_v23 = vmax.f32 %v858_v19, 0.0 }
 0x203   : > { %v890_v25 = vmax.f32 %v850_v21, 0.0 }
 0x204   : > { %v908_v26 = vpack.c.bf16 %v892_v23, %v891_v22 }
 0x205   : > { %v907_v28 = vpack.c.bf16 %v890_v25, %v889_v24 }
 0x207   : > { %1496 = vmatprep.mubr.msk.bf16.mxu0 %vm354_vm0, %v907_v28 }
 0x208   : > { %1497 = vmatmul.mubr.msk.bf16.gmra.mrb[44].mxu0 %vm354_vm0, %v908_v26 }
 0x2a3   : > { %v1470_v31 = vpop.f32.mrb[16].mxu0 }
 0x2a4   : > { %v1023_v32 = vadd.f32 %v1470_v31, %v1773_v29  ;;  %v1014_v33 = vpop.f32.mrb[17].mxu0 }
 0x2a5   : > { %v1015_v56 = vadd.f32 %v1773_v29, %v1014_v33  ;;  %v1471_v34 = vpop.f32.mrb[18].mxu0 }
 0x2a6   : > { %v1143_v35 = vmax.f32 %v1023_v32, 0.0  ;;  %v1026_v36 = vadd.f32 %v1471_v34, %v1773_v29  ;;  %v1017_v37 = vpop.f32.mrb[19].mxu0 }
 0x2a7   : > { %v1141_v38 = vmax.f32 %v1015_v56, 0.0  ;;  %v1018_v39 = vadd.f32 %v1773_v29, %v1017_v37 }
 0x2a8   : > { %1176 = vst.msk [vmem:[%s1781_s12 + $0x10] sm:$0xff] %vm1173_vm2, %v1143_v35  ;;  %v1144_v40 = vmax.f32 %v1026_v36, 0.0 }
 0x2a9   : > { %1174 = vst.msk [vmem:[%s1781_s12] sm:$0xff] %vm1173_vm2, %v1141_v38  ;;  %v1142_v41 = vmax.f32 %v1018_v39, 0.0 }
 0x2aa   : > { %1177 = vst.msk [vmem:[%s1781_s12 + $0x18] sm:$0xff] %vm1173_vm2, %v1144_v40 }
 0x2ab   : > { %1175 = vst.msk [vmem:[%s1781_s12 + $0x8] sm:$0xff] %vm1173_vm2, %v1142_v41  ;;  %v1474_v42 = vpop.f32.mrb[20].mxu0 }
 0x2ac   : > { %v1039_v43 = vadd.f32 %v1474_v42, %v1773_v29  ;;  %v1030_v30 = vpop.f32.mrb[21].mxu0 }
 0x2ad   : > { %v1031_v27 = vadd.f32 %v1773_v29, %v1030_v30  ;;  %v1475_v44 = vpop.f32.mrb[22].mxu0 }
 0x2ae   : > { %v1147_v45 = vmax.f32 %v1039_v43, 0.0  ;;  %v1042_v46 = vadd.f32 %v1475_v44, %v1773_v29  ;;  %v1033_v47 = vpop.f32.mrb[23].mxu0 }
 0x2af   : > { %v1145_v48 = vmax.f32 %v1031_v27, 0.0  ;;  %v1034_v49 = vadd.f32 %v1773_v29, %v1033_v47 }
 0x2b0   : > { %1180 = vst.msk [vmem:[%s1781_s12 + $0x30] sm:$0xff] %vm1173_vm2, %v1147_v45  ;;  %v1148_v50 = vmax.f32 %v1042_v46, 0.0 }
 0x2b1   : > { %1178 = vst.msk [vmem:[%s1781_s12 + $0x20] sm:$0xff] %vm1173_vm2, %v1145_v48  ;;  %v1146_v51 = vmax.f32 %v1034_v49, 0.0 }
 0x2b2   : > { %1181 = vst.msk [vmem:[%s1781_s12 + $0x38] sm:$0xff] %vm1173_vm2, %v1148_v50 }
 0x2b3   : > { %1179 = vst.msk [vmem:[%s1781_s12 + $0x28] sm:$0xff] %vm1173_vm2, %v1146_v51  ;;  %v1478_v52 = vpop.f32.mrb[24].mxu0 }
 0x2b4   : > { %v1055_v53 = vadd.f32 %v1478_v52, %v1773_v29  ;;  %v1046_v54 = vpop.f32.mrb[25].mxu0 }
 0x2b5   : > { %v1047_v55 = vadd.f32 %v1773_v29, %v1046_v54  ;;  %v1479_v57 = vpop.f32.mrb[26].mxu0 }
 0x2b6   : > { %v1151_v58 = vmax.f32 %v1055_v53, 0.0  ;;  %v1058_v59 = vadd.f32 %v1479_v57, %v1773_v29  ;;  %v1049_v60 = vpop.f32.mrb[27].mxu0 }
 0x2b7   : > { %v1149_v61 = vmax.f32 %v1047_v55, 0.0  ;;  %v1050_v62 = vadd.f32 %v1773_v29, %v1049_v60 }
 0x2b8   : > { %1184 = vst.msk [vmem:[%s1781_s12 + $0x50] sm:$0xff] %vm1173_vm2, %v1151_v58  ;;  %v1152_v63 = vmax.f32 %v1058_v59, 0.0 }
 0x2b9   : > { %1182 = vst.msk [vmem:[%s1781_s12 + $0x40] sm:$0xff] %vm1173_vm2, %v1149_v61  ;;  %v1150_v0 = vmax.f32 %v1050_v62, 0.0 }
 0x2ba   : > { %1185 = vst.msk [vmem:[%s1781_s12 + $0x58] sm:$0xff] %vm1173_vm2, %v1152_v63 }
 0x2bb   : > { %1183 = vst.msk [vmem:[%s1781_s12 + $0x48] sm:$0xff] %vm1173_vm2, %v1150_v0  ;;  %v1482_v1 = vpop.f32.mrb[28].mxu0 }
 0x2bc   : > { %v1071_v2 = vadd.f32 %v1482_v1, %v1773_v29  ;;  %v1062_v3 = vpop.f32.mrb[29].mxu0 }
 0x2bd   : > { %v1063_v4 = vadd.f32 %v1773_v29, %v1062_v3  ;;  %v1483_v5 = vpop.f32.mrb[30].mxu0 }
 0x2be   : > { %v1155_v6 = vmax.f32 %v1071_v2, 0.0  ;;  %v1074_v7 = vadd.f32 %v1483_v5, %v1773_v29  ;;  %v1065_v8 = vpop.f32.mrb[31].mxu0 }
 0x2bf   : > { %v1153_v9 = vmax.f32 %v1063_v4, 0.0  ;;  %v1066_v10 = vadd.f32 %v1773_v29, %v1065_v8 }
 0x2c0   : > { %1188 = vst.msk [vmem:[%s1781_s12 + $0x70] sm:$0xff] %vm1173_vm2, %v1155_v6  ;;  %v1156_v11 = vmax.f32 %v1074_v7, 0.0 }
 0x2c1   : > { %1186 = vst.msk [vmem:[%s1781_s12 + $0x60] sm:$0xff] %vm1173_vm2, %v1153_v9  ;;  %v1154_v12 = vmax.f32 %v1066_v10, 0.0 }
 0x2c2   : > { %1189 = vst.msk [vmem:[%s1781_s12 + $0x78] sm:$0xff] %vm1173_vm2, %v1156_v11 }
 0x2c3   : > { %1187 = vst.msk [vmem:[%s1781_s12 + $0x68] sm:$0xff] %vm1173_vm2, %v1154_v12  ;;  %v1486_v13 = vpop.f32.mrb[32].mxu0 }
 0x2c4   : > { %v1087_v14 = vadd.f32 %v1486_v13, %v1773_v29  ;;  %v1078_v15 = vpop.f32.mrb[33].mxu0 }
 0x2c5   : > { %v1079_v16 = vadd.f32 %v1773_v29, %v1078_v15  ;;  %v1487_v17 = vpop.f32.mrb[34].mxu0 }
 0x2c6   : > { %v1159_v18 = vmax.f32 %v1087_v14, 0.0  ;;  %v1090_v19 = vadd.f32 %v1487_v17, %v1773_v29  ;;  %v1081_v20 = vpop.f32.mrb[35].mxu0 }
 0x2c7   : > { %v1157_v21 = vmax.f32 %v1079_v16, 0.0  ;;  %v1082_v22 = vadd.f32 %v1773_v29, %v1081_v20 }
 0x2c8   : > { %1192 = vst.msk [vmem:[%s1781_s12 + $0x90] sm:$0xff] %vm1173_vm2, %v1159_v18  ;;  %v1160_v23 = vmax.f32 %v1090_v19, 0.0 }
 0x2c9   : > { %1190 = vst.msk [vmem:[%s1781_s12 + $0x80] sm:$0xff] %vm1173_vm2, %v1157_v21  ;;  %v1158_v24 = vmax.f32 %v1082_v22, 0.0 }
 0x2ca   : > { %1193 = vst.msk [vmem:[%s1781_s12 + $0x98] sm:$0xff] %vm1173_vm2, %v1160_v23 }
 0x2cb   : > { %1191 = vst.msk [vmem:[%s1781_s12 + $0x88] sm:$0xff] %vm1173_vm2, %v1158_v24  ;;  %v1490_v25 = vpop.f32.mrb[36].mxu0 }
 0x2cc   : > { %v1103_v26 = vadd.f32 %v1490_v25, %v1773_v29  ;;  %v1094_v28 = vpop.f32.mrb[37].mxu0 }
 0x2cd   : > { %v1095_v31 = vadd.f32 %v1773_v29, %v1094_v28  ;;  %v1491_v32 = vpop.f32.mrb[38].mxu0 }
 0x2ce   : > { %v1163_v33 = vmax.f32 %v1103_v26, 0.0  ;;  %v1106_v56 = vadd.f32 %v1491_v32, %v1773_v29  ;;  %v1097_v34 = vpop.f32.mrb[39].mxu0 }
 0x2cf   : > { %v1161_v35 = vmax.f32 %v1095_v31, 0.0  ;;  %v1098_v36 = vadd.f32 %v1773_v29, %v1097_v34 }
 0x2d0   : > { %1196 = vst.msk [vmem:[%s1781_s12 + $0xb0] sm:$0xff] %vm1173_vm2, %v1163_v33  ;;  %v1164_v37 = vmax.f32 %v1106_v56, 0.0 }
 0x2d1   : > { %1194 = vst.msk [vmem:[%s1781_s12 + $0xa0] sm:$0xff] %vm1173_vm2, %v1161_v35  ;;  %v1162_v38 = vmax.f32 %v1098_v36, 0.0 }
 0x2d2   : > { %1197 = vst.msk [vmem:[%s1781_s12 + $0xb8] sm:$0xff] %vm1173_vm2, %v1164_v37 }
 0x2d3   : > { %1195 = vst.msk [vmem:[%s1781_s12 + $0xa8] sm:$0xff] %vm1173_vm2, %v1162_v38  ;;  %v1494_v39 = vpop.f32.mrb[40].mxu0 }
 0x2d4   : > { %v1119_v40 = vadd.f32 %v1494_v39, %v1773_v29  ;;  %v1110_v41 = vpop.f32.mrb[41].mxu0 }
 0x2d5   : > { %v1111_v42 = vadd.f32 %v1773_v29, %v1110_v41  ;;  %v1495_v43 = vpop.f32.mrb[42].mxu0 }
 0x2d6   : > { %v1167_v30 = vmax.f32 %v1119_v40, 0.0  ;;  %v1122_v27 = vadd.f32 %v1495_v43, %v1773_v29  ;;  %v1113_v44 = vpop.f32.mrb[43].mxu0 }
 0x2d7   : > { %v1165_v45 = vmax.f32 %v1111_v42, 0.0  ;;  %v1114_v46 = vadd.f32 %v1773_v29, %v1113_v44 }
 0x2d8   : > { %1200 = vst.msk [vmem:[%s1781_s12 + $0xd0] sm:$0xff] %vm1173_vm2, %v1167_v30  ;;  %v1168_v47 = vmax.f32 %v1122_v27, 0.0 }
 0x2d9   : > { %1198 = vst.msk [vmem:[%s1781_s12 + $0xc0] sm:$0xff] %vm1173_vm2, %v1165_v45  ;;  %v1166_v48 = vmax.f32 %v1114_v46, 0.0 }
 0x2da   : > { %1201 = vst.msk [vmem:[%s1781_s12 + $0xd8] sm:$0xff] %vm1173_vm2, %v1168_v47 }
 0x2db   : > { %1199 = vst.msk [vmem:[%s1781_s12 + $0xc8] sm:$0xff] %vm1173_vm2, %v1166_v48  ;;  %v1498_v49 = vpop.f32.mrb[44].mxu0 }
 0x2dc   : > { %v1135_v50 = vadd.f32 %v1498_v49, %v1773_v29  ;;  %v1126_v51 = vpop.f32.mrb[45].mxu0 }
 0x2dd   : > { %v1127_v52 = vadd.f32 %v1773_v29, %v1126_v51  ;;  %v1499_v53 = vpop.f32.mrb[46].mxu0 }
 0x2de   : > { %v1171_v54 = vmax.f32 %v1135_v50, 0.0  ;;  %v1138_v55 = vadd.f32 %v1499_v53, %v1773_v29  ;;  %v1129_v57 = vpop.f32.mrb[47].mxu0 }
 0x2df   : > { %v1169_v58 = vmax.f32 %v1127_v52, 0.0  ;;  %v1130_v59 = vadd.f32 %v1773_v29, %v1129_v57 }
 0x2e0   : > { %1204 = vst.msk [vmem:[%s1781_s12 + $0xf0] sm:$0xff] %vm1173_vm2, %v1171_v54  ;;  %v1172_v60 = vmax.f32 %v1138_v55, 0.0 }
 0x2e1   : > { %1202 = vst.msk [vmem:[%s1781_s12 + $0xe0] sm:$0xff] %vm1173_vm2, %v1169_v58  ;;  %v1170_v61 = vmax.f32 %v1130_v59, 0.0 }
 0x2e2   : > { %1205 = vst.msk [vmem:[%s1781_s12 + $0xf8] sm:$0xff] %vm1173_vm2, %v1172_v60 }
 0x2e3   : > { %1203 = vst.msk [vmem:[%s1781_s12 + $0xe8] sm:$0xff] %vm1173_vm2, %v1170_v61 }
 0x2e4 PF: > { %s17_s24 = sadd.s32 1, %s1526_s24  }
 0x2e5   : > { %p14_p4 = scmp.ge.s32.totalorder %s17_s24, 4  }
 0x2e7   :  { %16 = sbr.rel (!%p14_p4) target bundleno = 1 (0x1), region = 78 }

</bundles_post_ra>
